<compile_context>
chip_gen: v6e
topology: v6e:2x2x1
jax: 0.10.0
libtpu: 0.0.40
codegen_flags: <defaults>
</compile_context>

<pallas_src>
import functools
import math

import jax
import jax.numpy as jnp
from jax.experimental import pallas as pl
from jax.experimental.pallas import tpu as pltpu


# ----------------------------------------------------------------------------
# Kernel: transposed (feature-major, batch-on-lanes) FBF + MLP forward.
# ----------------------------------------------------------------------------
def fbf_mlp_kernel(xT_ref, f_ref, w_ref, o_ref, *, K):
    twoK = 2 * K

    xT = xT_ref[...]                       # (2, TB) f32, batch on lanes
    x0 = xT[0:1, :]                        # (1, TB)
    x1 = xT[1:2, :]                        # (1, TB)

    # inner rows [0:K)  = freq0 * x0
    # inner rows [K:2K) = freq0 * x1
    # Built with broadcast multiplies (exact, no concat / no cross-lane moves):
    # f_ref[:, 0] is freq0 on rows [0:K) and 0 elsewhere; f_ref[:, 1] the converse.
    inner = f_ref[:, 0:1] * x0 + f_ref[:, 1:2] * x1          # (2K, TB)

    cos_f = jnp.cos(inner)                                   # (2K, TB)
    sin_f = jnp.sin(inner)                                   # (2K, TB)

    # Packed weight slab (amp already folded into the layer-1 weights).
    w1c = w_ref[:, 0:twoK]                                   # (8, 2K)  cos block
    w1s = w_ref[:, twoK:2 * twoK]                            # (8, 2K)  sin block
    w2 = w_ref[:, 2 * twoK:2 * twoK + 8]                     # (8, 8)
    w3 = w_ref[:, 2 * twoK + 8:2 * twoK + 9]                 # (8, 1)
    b1 = w_ref[:, 2 * twoK + 9:2 * twoK + 10]                # (8, 1)
    b2 = w_ref[:, 2 * twoK + 10:2 * twoK + 11]               # (8, 1)
    b3 = w_ref[0:1, 2 * twoK + 11:2 * twoK + 12]             # (1, 1)

    # layer1 -> tanh      (split cos/sin matmuls instead of concat-then-matmul)
    h1 = jnp.tanh(jnp.dot(w1c, cos_f, preferred_element_type=jnp.float32)
                  + jnp.dot(w1s, sin_f, preferred_element_type=jnp.float32)
                  + b1)                                      # (8, TB)
    # layer2 -> tanh
    h2 = jnp.tanh(jnp.dot(w2, h1, preferred_element_type=jnp.float32) + b2)  # (8, TB)
    # output layer (8 -> 1): broadcast-mult + sublane reduce (lane-dense output)
    out = jnp.sum(w3 * h2, axis=0, keepdims=True) + b3       # (1, TB)

    o_ref[...] = out.astype(o_ref.dtype)


# ----------------------------------------------------------------------------
# Wrapper-side parameter packing (pure layout plumbing, done once).
# ----------------------------------------------------------------------------
def _pack_params(params):
    freq0, amp, w1, b1, w2, b2, w3, b3 = params
    K = freq0.shape[1]
    twoK = 2 * K

    # (2K, 2): column 0 scales x[:, 0] (rows [0:K)), column 1 scales x[:, 1].
    f_packed = jnp.zeros((twoK, 2), jnp.float32)
    f_packed = f_packed.at[0:K, 0].set(freq0[0])
    f_packed = f_packed.at[K:twoK, 1].set(freq0[0])

    # Fold amp into layer-1 weights:  (feats * amp) @ W1 == feats @ (amp.T * W1)
    w1_scaled = amp[0][:, None] * w1                # (4K, 8)
    w1cT = w1_scaled[0:twoK, :].T                   # (8, 2K)  cos-feature block
    w1sT = w1_scaled[twoK:2 * twoK, :].T            # (8, 2K)  sin-feature block
    w2T = w2.T                                      # (8, 8)
    b3_col = jnp.zeros((8, 1), jnp.float32).at[0, 0].set(b3[0, 0])

    w_packed = jnp.concatenate(
        [w1cT, w1sT, w2T, w3, b1.T, b2.T, b3_col], axis=1)   # (8, 4K + 12)
    return f_packed.astype(jnp.float32), w_packed.astype(jnp.float32)


def _choose_tile_b(Bp, cap=4096):
    """Largest lane-aligned divisor of Bp (capped), preferring >= 2 grid steps
    so both v7x TensorCores get work."""
    divisors = [t for t in range(128, min(Bp, cap) + 1, 128) if Bp % t == 0]
    multi_step = [t for t in divisors if Bp // t >= 2]
    return max(multi_step) if multi_step else max(divisors)


def test_fbf_layer_forward(x, params, *, tile_b=None):
    """x: (B, 2) float32. Returns (B, 1) float32 matching test_FBF_layer.forward."""
    freq0 = params[0]
    K = freq0.shape[1]
    B = x.shape[0]

    # Lane-dense layout: pad batch to a multiple of 128 and put it on the lane axis.
    Bp = ((B + 127) // 128) * 128
    x32 = x.astype(jnp.float32)
    xT = (jnp.pad(x32, ((0, Bp - B), (0, 0))) if Bp != B else x32).T   # (2, Bp)

    if tile_b is None:
        tile_b = _choose_tile_b(Bp)
    assert Bp % tile_b == 0 and tile_b % 128 == 0

    f_packed, w_packed = _pack_params(params)
    kernel = functools.partial(fbf_mlp_kernel, K=K)
    grid = (Bp // tile_b,)

    out_t = pl.pallas_call(
        kernel,
        out_shape=jax.ShapeDtypeStruct((1, Bp), jnp.float32),
        grid_spec=pltpu.PrefetchScalarGridSpec(
            num_scalar_prefetch=0,
            grid=grid,
            in_specs=[
                pl.BlockSpec((2, tile_b), lambda i: (0, i)),     # x, batch on lanes
                pl.BlockSpec(f_packed.shape, lambda i: (0, 0)),  # frequency pack
                pl.BlockSpec(w_packed.shape, lambda i: (0, 0)),  # weight/bias slab
            ],
            out_specs=pl.BlockSpec((1, tile_b), lambda i: (0, i)),
        ),
        compiler_params=pltpu.CompilerParams(
            dimension_semantics=("parallel",)),
    )(xT, f_packed, w_packed)

    return out_t[0, :B].reshape(B, 1)


# ----------------------------------------------------------------------------
# Parameter init (mirrors the PyTorch module's shapes / init) + JAX reference.
# ----------------------------------------------------------------------------
def init_params(key, num_FBT):
    if num_FBT % 2:
        num_FBT -= 1                      # module drops to N-1 terms
    size_in = 2
    K = num_FBT // 2
    feat_dim = num_FBT * size_in          # = 2 * num_FBT

    k_amp, k_w1, k_b1, k_w2, k_b2, k_w3, k_b3 = jax.random.split(key, 7)

    # freq[0, t] = 2 * t * pi  (freq[1] is never used in forward)
    freq0 = (2.0 * math.pi * jnp.arange(K, dtype=jnp.float32)).reshape(1, K)

    amp_bound = 1.0 / math.sqrt(feat_dim)
    amp = jax.random.uniform(k_amp, (1, feat_dim), jnp.float32, -amp_bound, amp_bound)

    def linear_init(kw, kb, fan_in, fan_out):
        bound = 1.0 / math.sqrt(fan_in)
        w = jax.random.uniform(kw, (fan_in, fan_out), jnp.float32, -bound, bound)
        b = jax.random.uniform(kb, (1, fan_out), jnp.float32, -bound, bound)
        return w, b

    w1, b1 = linear_init(k_w1, k_b1, feat_dim, 8)
    w2, b2 = linear_init(k_w2, k_b2, 8, 8)
    w3, b3 = linear_init(k_w3, k_b3, 8, 1)

    return (freq0, amp, w1, b1, w2, b2, w3, b3)


def reference_forward(x, params):
    """Plain-JAX reference reproducing the PyTorch forward semantics."""
    freq0, amp, w1, b1, w2, b2, w3, b3 = params
    inner = jnp.concatenate([x[:, 0:1] * freq0, x[:, 1:2] * freq0], axis=1)
    feats = jnp.concatenate([jnp.cos(inner), jnp.sin(inner)], axis=1) * amp
    h1 = jnp.tanh(feats @ w1 + b1)
    h2 = jnp.tanh(h1 @ w2 + b2)
    return h2 @ w3 + b3


if __name__ == "__main__":
    num_FBT = 8      # even number of Fourier terms (K = 4)
    B = 256          # two lane-dense grid steps of 128

    key = jax.random.PRNGKey(0)
    k_x, k_p = jax.random.split(key)
    x = jax.random.normal(k_x, (B, 2), jnp.float32)
    params = init_params(k_p, num_FBT)

    out = test_fbf_layer_forward(x, params)
    out = jax.block_until_ready(out)

    ref = reference_forward(x, params)
    assert out.shape == (B, 1)
    assert jnp.allclose(out, ref, atol=2e-5, rtol=2e-5), "mismatch vs reference"

    print("KERNEL_OK")
</pallas_src>

<mosaic_0001>
module attributes {stable_mosaic.version = 11 : i64} {
  func.func @fbf_mlp_kernel(%arg0: i32, %arg1: memref<2x128xf32, #tpu.memory_space<vmem>>, %arg2: memref<8x2xf32, #tpu.memory_space<vmem>>, %arg3: memref<8x28xf32, #tpu.memory_space<vmem>>, %arg4: memref<1x128xf32, #tpu.memory_space<vmem>>) attributes {dimension_semantics = [#tpu.dimension_semantics<parallel>], iteration_bounds = array<i64: 2>, scalar_prefetch = 0 : i64, scratch_operands = 0 : i64, tpu.core_type = #tpu.core_type<tc>, window_params = [{transform_indices = @transform_0, window_bounds = array<i64: 2, 128>}, {pipeline_mode = #tpu.pipeline_mode<synchronous>, transform_indices = @transform_1, window_bounds = array<i64: 8, 2>}, {pipeline_mode = #tpu.pipeline_mode<synchronous>, transform_indices = @transform_2, window_bounds = array<i64: 8, 28>}, {transform_indices = @transform_3, window_bounds = array<i64: 1, 128>}]} {
    %c0 = arith.constant 0 : index
    %c0_0 = arith.constant 0 : index
    %0 = vector.load %arg1[%c0, %c0_0] : memref<2x128xf32, #tpu.memory_space<vmem>>, vector<2x128xf32>
    %1 = vector.extract_strided_slice %0 {offsets = [0, 0], sizes = [1, 128], strides = [1, 1]} : vector<2x128xf32> to vector<1x128xf32>
    %2 = vector.extract_strided_slice %0 {offsets = [1, 0], sizes = [1, 128], strides = [1, 1]} : vector<2x128xf32> to vector<1x128xf32>
    %c0_1 = arith.constant 0 : index
    %c0_2 = arith.constant 0 : index
    %3 = vector.load %arg2[%c0_1, %c0_2] : memref<8x2xf32, #tpu.memory_space<vmem>>, vector<8x1xf32>
    %4 = vector.broadcast %3 : vector<8x1xf32> to vector<8x128xf32>
    %5 = vector.broadcast %1 : vector<1x128xf32> to vector<8x128xf32>
    %6 = arith.mulf %4, %5 : vector<8x128xf32>
    %c0_3 = arith.constant 0 : index
    %c1 = arith.constant 1 : index
    %7 = vector.load %arg2[%c0_3, %c1] : memref<8x2xf32, #tpu.memory_space<vmem>>, vector<8x1xf32>
    %8 = vector.broadcast %7 : vector<8x1xf32> to vector<8x128xf32>
    %9 = vector.broadcast %2 : vector<1x128xf32> to vector<8x128xf32>
    %10 = arith.mulf %8, %9 : vector<8x128xf32>
    %11 = arith.addf %6, %10 : vector<8x128xf32>
    %12 = math.cos %11 : vector<8x128xf32>
    %13 = math.sin %11 : vector<8x128xf32>
    %c0_4 = arith.constant 0 : index
    %c0_5 = arith.constant 0 : index
    %14 = vector.load %arg3[%c0_4, %c0_5] : memref<8x28xf32, #tpu.memory_space<vmem>>, vector<8x8xf32>
    %c0_6 = arith.constant 0 : index
    %c8 = arith.constant 8 : index
    %15 = vector.load %arg3[%c0_6, %c8] : memref<8x28xf32, #tpu.memory_space<vmem>>, vector<8x8xf32>
    %c0_7 = arith.constant 0 : index
    %c16 = arith.constant 16 : index
    %16 = vector.load %arg3[%c0_7, %c16] : memref<8x28xf32, #tpu.memory_space<vmem>>, vector<8x8xf32>
    %c0_8 = arith.constant 0 : index
    %c24 = arith.constant 24 : index
    %17 = vector.load %arg3[%c0_8, %c24] : memref<8x28xf32, #tpu.memory_space<vmem>>, vector<8x1xf32>
    %c0_9 = arith.constant 0 : index
    %c25 = arith.constant 25 : index
    %18 = vector.load %arg3[%c0_9, %c25] : memref<8x28xf32, #tpu.memory_space<vmem>>, vector<8x1xf32>
    %c0_10 = arith.constant 0 : index
    %c26 = arith.constant 26 : index
    %19 = vector.load %arg3[%c0_10, %c26] : memref<8x28xf32, #tpu.memory_space<vmem>>, vector<8x1xf32>
    %c0_11 = arith.constant 0 : index
    %c27 = arith.constant 27 : index
    %20 = vector.load %arg3[%c0_11, %c27] : memref<8x28xf32, #tpu.memory_space<vmem>>, vector<1x1xf32>
    %cst = arith.constant dense<0.000000e+00> : vector<8x128xf32>
    %21 = tpu.matmul %14, %12, %cst {dimension_numbers = #tpu.dot_dimension_numbers<[1], [0], [0], [1], [0, 0, 1, 1], [], []>} : vector<8x8xf32>, vector<8x128xf32>, vector<8x128xf32> -> vector<8x128xf32>
    %cst_12 = arith.constant dense<0.000000e+00> : vector<8x128xf32>
    %22 = tpu.matmul %15, %13, %cst_12 {dimension_numbers = #tpu.dot_dimension_numbers<[1], [0], [0], [1], [0, 0, 1, 1], [], []>} : vector<8x8xf32>, vector<8x128xf32>, vector<8x128xf32> -> vector<8x128xf32>
    %23 = arith.addf %21, %22 : vector<8x128xf32>
    %24 = vector.broadcast %18 : vector<8x1xf32> to vector<8x128xf32>
    %25 = arith.addf %23, %24 : vector<8x128xf32>
    %26 = math.tanh %25 : vector<8x128xf32>
    %cst_13 = arith.constant dense<0.000000e+00> : vector<8x128xf32>
    %27 = tpu.matmul %16, %26, %cst_13 {dimension_numbers = #tpu.dot_dimension_numbers<[1], [0], [0], [1], [0, 0, 1, 1], [], []>} : vector<8x8xf32>, vector<8x128xf32>, vector<8x128xf32> -> vector<8x128xf32>
    %28 = vector.broadcast %19 : vector<8x1xf32> to vector<8x128xf32>
    %29 = arith.addf %27, %28 : vector<8x128xf32>
    %30 = math.tanh %29 : vector<8x128xf32>
    %31 = vector.broadcast %17 : vector<8x1xf32> to vector<8x128xf32>
    %32 = arith.mulf %31, %30 : vector<8x128xf32>
    %cst_14 = arith.constant dense<0.000000e+00> : vector<128xf32>
    %33 = vector.multi_reduction <add>, %32, %cst_14 [0] : vector<8x128xf32> to vector<128xf32>
    %34 = vector.shape_cast %33 : vector<128xf32> to vector<1x128xf32>
    %35 = vector.broadcast %20 : vector<1x1xf32> to vector<1x128xf32>
    %36 = arith.addf %34, %35 : vector<1x128xf32>
    %c0_15 = arith.constant 0 : index
    %c0_16 = arith.constant 0 : index
    %37 = vector.load %arg4[%c0_15, %c0_16] : memref<1x128xf32, #tpu.memory_space<vmem>>, vector<1x128xf32>
    tpu.vector_store %arg4[%c0_15, %c0_16], %36 {strides = array<i32>} : memref<1x128xf32, #tpu.memory_space<vmem>>, vector<1x128xf32>,
    return
  }
  func.func @transform_0(%arg0: i32) -> (i32, i32) {
    %c0_i32 = arith.constant 0 : i32
    %c0_i32_0 = arith.constant 0 : i32
    return %c0_i32, %arg0 : i32, i32
  }
  func.func @transform_1(%arg0: i32) -> (i32, i32) {
    %c0_i32 = arith.constant 0 : i32
    %c0_i32_0 = arith.constant 0 : i32
    %c0_i32_1 = arith.constant 0 : i32
    return %c0_i32, %c0_i32_0 : i32, i32
  }
  func.func @transform_2(%arg0: i32) -> (i32, i32) {
    %c0_i32 = arith.constant 0 : i32
    %c0_i32_0 = arith.constant 0 : i32
    %c0_i32_1 = arith.constant 0 : i32
    return %c0_i32, %c0_i32_0 : i32, i32
  }
  func.func @transform_3(%arg0: i32) -> (i32, i32) {
    %c0_i32 = arith.constant 0 : i32
    %c0_i32_0 = arith.constant 0 : i32
    return %c0_i32, %arg0 : i32, i32
  }
}

</mosaic_0001>

<bundles_post_ra>
// kernel: tpu_custom_call.1
= control target key start
LH: loop header
LB: loop body
LE: loop exit
PB: predicated region body
PF: predicated region fallthrough
CT: control target
= control target key end

     0   :  { %8 = vsyncpa [#allocation3], 0  ;;  %s1065_s0 = inlined_call_operand.vmem [shape: f32[2,256], index: 0, kind: input, shape index: {}]   ;;  %s1066_s1 = inlined_call_operand.vmem [shape: f32[8,2], index: 1, kind: input, shape index: {}]   ;;  %s1067_s2 = inlined_call_operand.vmem [shape: f32[8,28], index: 2, kind: input, shape index: {}]   ;;  %s1068_s3 = inlined_call_operand.hbm [shape: f32[1,256], index: 3, kind: output, shape index: {}]  }
   0x1   :  { %10 = vsyncpa [#allocation3 + $0x1], 0  ;;  %s928_s12 = smov 0   ;;  %s930_s13 = smov 0  }
   0x2   :  { %s932_s14 = smov 0   ;;  %s934_s15 = smov 0  }
   0x3 LB: > { %s949_s16 = sadd.s32 4294967295, %s889_s15   ;;  %s715_s17 = sadd.s32 4294967294, %s889_s15   ;;  %s889_s15 = sphi %s934_s15, %s1074_s15   ;;  %s885_s14 = sphi %s932_s14, %s1073_s14   ;;  %s881_s13 = sphi %s930_s13, %s1072_s13   ;;  %s877_s12 = sphi %s928_s12, %s1071_s12  }
   0x4   : > { %s953_s18 = sadd.s32 1, %s889_s15   ;;  %s91_s19 = sadd.s32 1, %s885_s14 }
   0x5   : > { %s88_s20 = ssub.s32 %s889_s15, %s953_s18  ;;  %p101_p0 = scmp.ne.s32.totalorder %s885_s14, %s881_s13 }
   0x6   : > { %p89_p1 = scmp.eq.s32.totalorder %s88_s20, 0  ;;  %p102_p2 = scmp.eq.s32.totalorder %s949_s16, 1 }
   0x7   : > { %p107_p3 = scmp.ne.s32.totalorder %s881_s13, %s877_s12  ;;  %p108_p4 = scmp.eq.s32.totalorder %s715_s17, 1 }
   0x8   : > { %s964_s21 = scalar_select %p89_p1, %s885_s14, %s91_s19  }
   0x9   : > { %p966_p5 = por %p102_p2, %p101_p0  ;;  %p970_p6 = por %p108_p4, %p107_p3 }
   0xa   : > { %p718_p7 = scmp.ge.s32.totalorder %s889_s15, 1  ;;  %p139_p8 = scmp.lt.s32.totalorder %s889_s15, 3 }
   0xc   : > { %p140_p9 = pnand %p718_p7, %p139_p8 }
   0xd   : > { %s892_s28 = smov (!%p140_p9), 120   ;;  %s897_s29 = smov (!%p140_p9), 112  }
   0xe   : > { %143 = sbr.rel (%p140_p9) target bundleno = 687 (0x2af), region = 32  ;;  %p161_p10 = scmp.lt.s32.totalorder (!%p140_p9), %s949_s16, 1 }
   0xf   : > { %s159_s10 = sand.u32 (!%p140_p9), 1, %s881_s13   ;;  %s731_s11 = sshll.u32 (!%p140_p9), %s949_s16, 4 }
  0x10   : > { %s160_s17 = scalar_lea.vmem (!%p140_p9), [#allocation2], %s159_s10  ;;  %s658_s25 = scalar_lea.hbm (!%p140_p9), %s1068_s3, %s731_s11 }
  0x11   : > { %s660_s19 = sshll.u32 (!%p140_p9), %s160_s17, 4  ;;  %s648_s26 = scalar_lea.sflag (!%p140_p9), [#allocation3], %s159_s10  ;;  %s661_s19 = int_to_ptr.vmem [resolvable:$true] %s660_s19 }
  0x12   : > { %s829_s27 = scalar_lea.vmem (!%p140_p9), %s661_s19, 16 }
  0x13   : > { %v166_v0 = vld [vmem:[%s1066_s1] sm:$0xff]  ;;  %v891_v2 = vmov 0   ;;  %v893_v3 = vmov 1   ;;  %v894_v4 = vmov 0.0   ;;  %vm895_vm0 = vmmov 0   ;;  %s162_s30 = scalar_select %p161_p10, %s949_s16, 1 }
  0x14   : > { %v982_v1 = vld [vmem:[%s1067_s2] sm:$0xff]  ;;  %814 = vset.pattern.permute.xlu0 %v891_v2  ;;  %740 = vmatprep.subr.mxu0 %v894_v4  ;;  %v896_v5 = vmov 25   ;;  %v172_v6 = vlaneseq  ;;  %v898_v28 = vmov 683565275   ;;  %v899_v30 = vmov 2475754826   ;;  %p830_p11 = scmp.ne.s32.totalorder %s661_s19, %s829_s27 }
  0x15   : > { %397 = vrot.lane.b32.xlu1 %v982_v1, %s892_s28  ;;  %169 = vperm.xlu0 %814, %v166_v0   ;;  %s719_s4 = sshll.u32 %s162_s30, 1  ;;  %v900_v33 = vmov 2131351028   ;;  %v901_v36 = vmov 2102212464   ;;  %s907_s28 = smov [#allocation2]  }
  0x16   : > { %745 = vmatprep.subr.mxu1 %v894_v4  ;;  %742 = vmatprep.mubr.msk.f32.mxu0 %vm895_vm0, %v894_v4  ;;  %v173_v7 = vshrl.u32 %v172_v6, 7  ;;  %s164_s7 = scalar_lea.vmem %s1065_s0, %s719_s4  ;;  %v902_v39 = vmov 920167782   ;;  %v903_v42 = vmov 1326507024   ;;  %p831_p12 = pnand %p830_p11, %p966_p5 }
  0x17   : > { %747 = vmatprep.mubr.msk.f32.mxu1 %vm895_vm0, %v894_v4  ;;  %816 = vset.pattern.permute.xlu1 %v896_v5  ;;  %v165_v10 = vld [vmem:[%s164_s7] sm:$0x3] }
  0x18   : > { %v174_v8 = vsub.s32 0, %v173_v7  ;;  %v183_v9 = vsub.s32 1, %v173_v7  ;;  %p832_p13 = pneg %p831_p12 }
  0x19   : > { %815 = vset.pattern.permute.xlu0 %v893_v3  ;;  %545 = vperm.xlu1 %816, %v982_v1  }
  0x1a   : > { %178 = vperm.xlu0 %815, %v166_v0   ;;  %v175_v12 = vrot.slane %v165_v10, %v174_v8  ;;  %v184_v13 = vrot.slane %v165_v10, %v183_v9 }
  0x1d   : > { %554 = vrot.lane.b32.xlu1 %v982_v1, %s897_s29  ;;  %s833_s29 = sshll.u32 %s907_s28, 4  ;;  %s834_s29 = int_to_ptr.vmem [resolvable:$false] %s833_s29 }
  0x1e   : > { %s835_s16 = scalar_lea.vmem %s834_s29, 32  ;;  %p836_p0 = scmp.lt.s32.totalorder %s661_s19, %s834_s29 }
  0x1f   : > { %p837_p1 = scmp.lt.s32.totalorder %s835_s16, %s829_s27 }
  0x21   : > { %p838_p2 = por %p837_p1, %p836_p0 }
  0x23   : > { %p839_p3 = pnand %p838_p2, %p832_p13 }
  0x90   : > { %v170_v11 = vpop.permute.xlu0 %169 }
  0x91   : > { %v176_v15 = vmul.f32 %v175_v12, %v170_v11 }
  0x95   : > { %v179_v14 = vpop.permute.xlu0 %178 }
  0x96   : > { %v185_v16 = vmul.f32 %v184_v13, %v179_v14 }
  0x98   : > { %v998_v17 = vadd.f32 %v185_v16, %v176_v15 }
  0x9a   : > { %v190_v18 = vand.u32 2139095040, %v998_v17  ;;  %v187_v22 = vand.u32 2147483647, %v998_v17  ;;  %vm189_vm8 = vcmp.lt.s32.totalorder %v998_v17, 0 }
  0x9c   : > { %v191_v19 = vshrl.u32 %v190_v18, 23  ;;  %v194_v26 = vand.u32 8388607, %v187_v22  ;;  %vm188_vm9 = vcmp.le.f32.partialorder %v187_v22, 0.7853982 }
  0x9e   : > { %v720_v20 = vadd.s32 4294967169, %v191_v19  ;;  %v195_v44 = vor.u32 8388608, %v194_v26 }
  0xa0   : > { %v197_v21 = vadd.s32 1, %v720_v20  ;;  %v235_v58 = vshll.u32 %v195_v44, 8 }
  0xa2   : > { %vm198_vm1 = vcmp.gt.s32.totalorder %v197_v21, 0 }
  0xa3   : > { %v199_v23 = vsel %vm198_vm1, %v197_v21, 0  ;;  %vm279_vm1 = vweird.f32 %v998_v17 }
  0xa4   : > { %v201_v24 = vand.u32 31, %v199_v23  ;;  %v200_v27 = vshrl.u32 %v199_v23, 5 }
  0xa6   : > { %v202_v25 = vsub.s32 32, %v201_v24  ;;  %v204_v29 = vshll.u32 %v898_v28, %v201_v24  ;;  %v207_v31 = vshll.u32 %v899_v30, %v201_v24  ;;  %v210_v35 = vshll.u32 %v900_v33, %v201_v24 }
  0xa7   : > { %v213_v38 = vshll.u32 %v901_v36, %v201_v24  ;;  %v216_v41 = vshll.u32 %v902_v39, %v201_v24  ;;  %vm219_vm2 = vcmp.lt.s32.totalorder %v200_v27, 1  ;;  %vm222_vm3 = vcmp.lt.s32.totalorder %v200_v27, 4 }
  0xa8   : > { %v205_v32 = vshrl.u32 %v899_v30, %v202_v25  ;;  %v208_v34 = vshrl.u32 %v900_v33, %v202_v25  ;;  %v211_v37 = vshrl.u32 %v901_v36, %v202_v25  ;;  %v214_v40 = vshrl.u32 %v902_v39, %v202_v25 }
  0xa9   : > { %v217_v43 = vshrl.u32 %v903_v42, %v202_v25  ;;  %v203_v53 = vshrl.u32 %v898_v28, %v202_v25  ;;  %vm221_vm4 = vcmp.lt.s32.totalorder %v200_v27, 3  ;;  %vm220_vm5 = vcmp.lt.s32.totalorder %v200_v27, 2 }
  0xaa   : > { %v206_v45 = vor.u32 %v205_v32, %v204_v29  ;;  %v209_v46 = vor.u32 %v208_v34, %v207_v31  ;;  %v212_v47 = vor.u32 %v211_v37, %v210_v35  ;;  %v215_v48 = vor.u32 %v214_v40, %v213_v38 }
  0xab   : > { %v218_v49 = vor.u32 %v217_v43, %v216_v41 }
  0xac   : > { %v224_v50 = vsel %vm222_vm3, %v212_v47, 2102212464  ;;  %v227_v51 = vsel %vm219_vm2, %v206_v45, %v209_v46  ;;  %v231_v52 = vsel %vm219_vm2, %v209_v46, %v212_v47  ;;  %v228_v54 = vsel %vm222_vm3, %v215_v48, 920167782 }
  0xad   : > { %v232_v55 = vsel %vm222_vm3, %v218_v49, 1326507024  ;;  %v229_v56 = vsel %vm221_vm4, %v212_v47, %v228_v54  ;;  %v223_v59 = vsel %vm219_vm2, %v203_v53, %v206_v45  ;;  %v225_v60 = vsel %vm221_vm4, %v209_v46, %v224_v50  ;;  %v398_v49 = vpop.permute.xlu1 %397 }
  0xae   : > { %v233_v57 = vsel %vm221_vm4, %v215_v48, %v232_v55  ;;  %v230_v61 = vsel %vm220_vm5, %v227_v51, %v229_v56  ;;  %v226_v5 = vsel %vm220_vm5, %v223_v59, %v225_v60  ;;  %vm399_vm2 = vcmask 64512   ;;  %v395_v55 = vld [vmem:[%s1067_s2] sm:$0x1] }
  0xaf   : > { %v234_v62 = vsel %vm220_vm5, %v231_v52, %v233_v57  ;;  %v1007_v2 = vmul.u32.u64.low %v235_v58, %v230_v61  ;;  %v1008_v3 = vmul.u32.u64.high %v235_v58, %v230_v61, %v1007_v2  ;;  %v242_v7 = vmul.u32 %v235_v58, %v226_v5 }
  0xb0   : > { %v1004_v63 = vmul.u32.u64.low %v235_v58, %v234_v62  ;;  %v1005_v0 = vmul.u32.u64.high %v235_v58, %v234_v62, %v1004_v63  ;;  %v904_v54 = vmov 26   ;;  %v906_v56 = vmov 27  }
  0xb1   : > { %v245_v6 = vadd.s32 1, %v1008_v3  ;;  %817 = vset.pattern.permute.xlu0 %v904_v54  ;;  %v546_v57 = vpop.permute.xlu1 %545 }
  0xb2   : > { %vm244_vm6 = vc.u32 %v1005_v0, %v1007_v2  ;;  %v243_v20 = vadd.s32 %v1007_v2, %v1005_v0  ;;  %551 = vperm.xlu0 %817, %v982_v1  }
  0xb3   : > { %v246_v8 = vsel %vm244_vm6, %v245_v6, %v1008_v3 }
  0xb4   : > { %v247_v9 = vadd.s32 %v246_v8, %v242_v7 }
  0xb5   : > { %v555_v63 = vpop.permute.xlu1 %554 }
  0xb6   : > { %v248_v10 = vadd.s32 536870912, %v247_v9  ;;  %820 = vset.pattern.permute.xlu0 %v906_v56 }
  0xb8   : > { %v249_v11 = vshrl.u32 %v248_v10, 30 }
  0xba   : > { %v250_v12 = vshll.u32 %v249_v11, 30  ;;  %v273_v34 = vsub.s32 4, %v249_v11 }
  0xbc   : > { %v251_v13 = vsub.s32 %v247_v9, %v250_v12  ;;  %v274_v37 = vsel %vm189_vm8, %v273_v34, %v249_v11 }
  0xbd   : > { %v276_v38 = vsel %vm188_vm9, 0, %v274_v37 }
  0xbe   : > { %v253_v14 = vsub.s32 0, %v251_v13  ;;  %v383_v39 = vadd.s32 3, %v276_v38  ;;  %v280_v41 = vand.u32 3, %v276_v38 }
  0xc0   : > { %v721_v15 = vmin.u32 %v253_v14, %v251_v13  ;;  %v384_v40 = vand.u32 3, %v383_v39  ;;  %vm285_vm11 = vcmp.eq.s32.totalorder %v280_v41, 2  ;;  %vm282_vm13 = vcmp.eq.s32.totalorder %v280_v41, 0 }
  0xc1   : > { %vm281_vm15 = vcmp.lt.s32.totalorder %v280_v41, 2 }
  0xc2   : > { %v255_v16 = vclz %v721_v15  ;;  %vm389_vm10 = vcmp.eq.s32.totalorder %v384_v40, 2  ;;  %vm386_vm12 = vcmp.eq.s32.totalorder %v384_v40, 0  ;;  %vm385_vm14 = vcmp.lt.s32.totalorder %v384_v40, 2 }
  0xc4   : > { %v722_v18 = vadd.s32 4294967294, %v255_v16 }
  0xc6   : > { %vm723_vm7 = vcmp.lt.s32.totalorder %v722_v18, 0 }
  0xc7   : > { %v258_v19 = vsel %vm723_vm7, 0, %v722_v18 }
  0xc8   : > { %v259_v21 = vsub.s32 32, %v258_v19  ;;  %v263_v23 = vsub.s32 4294967266, %v258_v19  ;;  %v260_v24 = vshll.u32 %v251_v13, %v258_v19 }
  0xca   : > { %v261_v25 = vshrl.u32 %v243_v20, %v259_v21  ;;  %v264_v26 = vadd.s32 127, %v263_v23 }
  0xcc   : > { %v262_v27 = vor.u32 %v261_v25, %v260_v24  ;;  %v265_v28 = vshll.u32 %v264_v26, 23 }
  0xce   : > { %v266_v29 = vor.u32 4788187, %v265_v28  ;;  %v269_v31 = vcvt.s32.f32 %v262_v27 }
  0xd0   : > { %v267_v30 = vand.u32 2147483647, %v266_v29 }
  0xd2   : > { %v270_v32 = vmul.f32 %v269_v31, %v267_v30 }
  0xd4   : > { %v271_v33 = vxor.u32 2147483648, %v270_v32 }
  0xd6   : > { %v272_v35 = vsel %vm189_vm8, %v271_v33, %v270_v32 }
  0xd7   : > { %v275_v36 = vsel %vm188_vm9, %v998_v17, %v272_v35  ;;  %v905_v17 = vmov 24  }
  0xd8   : > { %821 = vcosq.f32 %v275_v36  ;;  %818 = vset.pattern.permute.xlu1 %v905_v17 }
  0xd9   : > { %823 = vsinq.f32 %v275_v36  ;;  %630 = vperm.xlu1 %818, %v982_v1  }
  0xdd   : > { %819 = vset.pattern.permute.xlu1 %v906_v56 }
  0xde   : > { %642 = vperm.xlu1 %819, %v395_v55  }
  0xe5   : > { %v822_v42 = vpop.eup %821 }
  0xe6   : > { %v824_v43 = vpop.eup %823  ;;  %v286_v44 = vxor.u32 2147483648, %v822_v42 }
  0xe7   : > { %v283_v45 = vxor.u32 2147483648, %v824_v43 }
  0xe8   : > { %v391_v46 = vsel %vm389_vm10, %v286_v44, %v824_v43  ;;  %v287_v22 = vsel %vm285_vm11, %v286_v44, %v824_v43 }
  0xe9   : > { %v388_v47 = vsel %vm386_vm12, %v822_v42, %v283_v45  ;;  %v284_v48 = vsel %vm282_vm13, %v822_v42, %v283_v45 }
  0xea   : > { %v392_v50 = vsel %vm385_vm14, %v388_v47, %v391_v46  ;;  %v288_v51 = vsel %vm281_vm15, %v284_v48, %v287_v22 }
  0xeb   : > { %v393_v52 = vsel %vm279_vm1, nan, %v392_v50  ;;  %v289_v53 = vsel %vm279_vm1, nan, %v288_v51 }
  0xec   : > { %741 = vmatpush3.msra.mxu0 %v393_v52  ;;  %746 = vmatpush3.msra.mxu1 %v289_v53 }
  0xed   : > { %743 = vmatmul.mubr.msk.f32.vlgmr.msra.gmra.mxu0 %vm399_vm2, %v398_v49  ;;  %748 = vmatmul.mubr.msk.f32.vlgmr.msra.gmra.mxu1 %vm399_vm2, %v982_v1 }
  0xee   : > { %750 = vmatprep.subr.mxu0 %v894_v4  ;;  %752 = vmatprep.mubr.msk.f32.mxu0 %vm895_vm0, %v894_v4 }
 0x12d   : > { %v552_v1 = vpop.permute.xlu0 %551 }
 0x154   : > { %v631_v6 = vpop.permute.xlu1 %630 }
 0x159   : > { %v643_v14 = vpop.permute.xlu1 %642 }
 0x1ad   : > { %v468_v58 = vpop.f32.mrf.mxu0  ;;  %v540_v59 = vpop.f32.mrf.mxu1 }
 0x1ae   : > { %v541_v4 = vadd.f32 %v540_v59, %v468_v58 }
 0x1af   : > { %v744_v60 = vpop.f32.mrf.mxu0  ;;  %v749_v61 = vpop.f32.mrf.mxu1 }
 0x1b0   : > { %v548_v62 = vadd.f32 %v546_v57, %v541_v4 }
 0x1b2   : > { %825 = vtanh.f32 %v548_v62 }
 0x1bf   : > { %v826_v0 = vpop.eup %825 }
 0x1c0   : > { %751 = vmatpush3.msra.mxu0 %v826_v0 }
 0x1c1   : > { %753 = vmatmul.mubr.msk.f32.vlgmr.msra.gmra.mxu0 %vm399_vm2, %v555_v63 }
 0x281   : > { %v624_v2 = vpop.f32.mrf.mxu0 }
 0x282   : > { %v625_v3 = vadd.f32 %v624_v2, %v552_v1 }
 0x283   : > { %v754_v5 = vpop.f32.mrf.mxu0 }
 0x284   : > { %827 = vtanh.f32 %v625_v3 }
 0x291   : > { %v828_v7 = vpop.eup %827 }
 0x292   : > { %v633_v8 = vmul.f32 %v828_v7, %v631_v6 }
 0x294   : > { %v634_v9 = vrot.slane %v633_v8, 4 }
 0x296   : > { %v635_v10 = vadd.f32 %v634_v9, %v633_v8 }
 0x298   : > { %v636_v11 = vrot.slane %v635_v10, 2 }
 0x29a   : > { %v637_v12 = vadd.f32 %v636_v11, %v635_v10 }
 0x29c   : > { %v638_v13 = vrot.slane %v637_v12, 1 }
 0x29e   : > { %v639_v15 = vadd.f32 %v638_v13, %v637_v12 }
 0x2a0   : > { %v645_v16 = vadd.f32 %v643_v14, %v639_v15 }
 0x2a2   : > { %646 = vst [vmem:[%s160_s17] sm:$0x1] %v645_v16 }
 0x2a3   : > { %842 = shalt.err (!%p839_p3)
}
 0x2a4   : > { %s843_s30 = scalar_lea.hbm %s658_s25, 16  ;;  %s847_s6 = scalar_lea.hbm %s1068_s3, 32 }
 0x2a5   : > { %p844_p4 = scmp.ne.s32.totalorder %s658_s25, %s843_s30  ;;  %p848_p9 = scmp.lt.s32.totalorder %s658_s25, %s1068_s3 }
 0x2a6   : > { %p849_p10 = scmp.lt.s32.totalorder %s847_s6, %s843_s30 }
 0x2a7   : > { %p845_p7 = pnand %p844_p4, %p966_p5 }
 0x2a8   : > { %p850_p11 = por %p849_p10, %p848_p9 }
 0x2a9   : > { %p846_p8 = pneg %p845_p7 }
 0x2ab   : > { %p851_p12 = pnand %p850_p11, %p846_p8 }
 0x2ad   : > { %854 = shalt.err (!%p851_p12)
}
 0x2ae   : > { %759 = dma.vmem_to_hbm [thread:$0]  (%p966_p5), %s661_s19, 16, %s658_s25, %s648_s26  }
 0x2af PF: > { %p765_p13 = scmp.ge.s32.totalorder %s889_s15, 2  ;;  %s672_s9 = sand.u32 1, %s877_s12  }
 0x2b0   : > { %s673_s10 = scalar_lea.sflag [#allocation3], %s672_s9 }
 0x2b1   : > { %p762_p0 = pnand %p765_p13, %p970_p6 }
 0x2b3   : > { %p763_p1 = pneg %p762_p0 }
 0x2b5   : > { %872 = dma.done.wait (%p763_p1), %s673_s10, 16  }
 0x2b6   : > { %874 = vsyncadd (%p763_p1), %s673_s10, 4294967280  ;;  %p13_p2 = scmp.ge.s32.totalorder %s953_s18, 4   ;;  %s1071_s12 = smov %s881_s13 }
 0x2b7   : > { %s1072_s13 = smov %s885_s14  ;;  %s1073_s14 = smov %s964_s21 }
 0x2b8   : > { %s1074_s15 = smov %s953_s18  ;;  %15 = sbr.rel (!%p13_p2) target bundleno = 3 (0x3), region = 67 }
 0x2bd   :  { %677 = vsyncpa [#allocation3], 1 }
 0x2be   :  { %679 = vsyncpa [#allocation3 + $0x1], 1 }

</bundles_post_ra>
